<compile_context>
chip_gen: v6e
topology: v6e:2x2x1
jax: 0.10.0
libtpu: 0.0.40
codegen_flags: <defaults>
</compile_context>

<pallas_src>
import jax
import jax.numpy as jnp
from jax.experimental import pallas as pl
from jax.experimental.pallas import tpu as pltpu


# ---------------------------------------------------------------------------
# Kernels
# ---------------------------------------------------------------------------
def _stats_kernel(x_ref, sum_ref, ssq_ref):
    # x_ref:   (1, C, T)  input dtype
    # sum_ref: (1, C, 1)  f32   -- resident accumulator across the HW grid axis
    # ssq_ref: (1, C, 1)  f32
    @pl.when(pl.program_id(1) == 0)
    def _():
        sum_ref[...] = jnp.zeros_like(sum_ref)
        ssq_ref[...] = jnp.zeros_like(ssq_ref)

    x = x_ref[...].astype(jnp.float32)                       # (1, C, T)
    sum_ref[...] += jnp.sum(x, axis=-1, keepdims=True)       # (1, C, 1)
    ssq_ref[...] += jnp.sum(x * x, axis=-1, keepdims=True)   # (1, C, 1)


def _apply_kernel(x_ref, s_ref, b_ref, o_ref):
    # x_ref: (1, C, T) input dtype; s_ref/b_ref: (1, C, 1) f32; o_ref: (1, C, T)
    x = x_ref[...].astype(jnp.float32)
    o_ref[...] = (x * s_ref[...] + b_ref[...]).astype(o_ref.dtype)


# ---------------------------------------------------------------------------
# Tile selection helper
# ---------------------------------------------------------------------------
def _pick_hw_tile(hw, c, itemsize, max_tile_bytes=4 << 20, max_lanes=2048):
    """Largest lane-dense HW tile that divides hw, is a multiple of 128, and
    keeps a (C, tile) buffer under max_tile_bytes.  Falls back to the full HW
    extent (always a legal block) if no nice divisor exists."""
    budget = max(128, max_tile_bytes // max(1, c * itemsize))
    target = min(max_lanes, budget)
    if hw <= target:
        return hw
    t = (target // 128) * 128
    for cand in range(t, 0, -128):
        if hw % cand == 0:
            return cand
    return hw  # no multiple-of-128 divisor; single full-row tile


# ---------------------------------------------------------------------------
# Wrapper
# ---------------------------------------------------------------------------
def conditional_instance_norm_2d_plus(x, y, embed_weight, num_features, bias=True):
    """Forward pass matching the PyTorch ConditionalInstanceNorm2dPlus module.

    x: (N, C, H, W), y: (N,) int32 class ids,
    embed_weight: (num_classes, 3*C) if bias else (num_classes, 2*C).
    """
    N, C, H, W = x.shape
    assert C == num_features
    HW = H * W
    x2 = x.reshape(N, C, HW)                     # keep incoming dtype (f32 or bf16)

    itemsize = jnp.dtype(x2.dtype).itemsize
    T = _pick_hw_tile(HW, C, itemsize)
    n_hw = HW // T

    # 2 double-buffered input tiles + 2 double-buffered output tiles, x2 margin.
    vmem_limit = int(max(16 << 20, min(48 << 20, 8 * C * T * max(itemsize, 4))))

    # ---------------- Pass 1: per-(N, C) sum and sum-of-squares ----------------
    stats_cost = pl.CostEstimate(
        flops=3 * N * C * HW,
        transcendentals=0,
        bytes_accessed=N * C * HW * itemsize + 2 * N * C * 4,
    )
    x_sum, x_ssq = pl.pallas_call(
        _stats_kernel,
        out_shape=(
            jax.ShapeDtypeStruct((N, C, 1), jnp.float32),
            jax.ShapeDtypeStruct((N, C, 1), jnp.float32),
        ),
        grid_spec=pltpu.PrefetchScalarGridSpec(
            num_scalar_prefetch=0,
            grid=(N, n_hw),
            in_specs=[pl.BlockSpec((1, C, T), lambda n, h: (n, 0, h))],
            out_specs=(
                pl.BlockSpec((1, C, 1), lambda n, h: (n, 0, 0)),
                pl.BlockSpec((1, C, 1), lambda n, h: (n, 0, 0)),
            ),
        ),
        compiler_params=pltpu.CompilerParams(
            dimension_semantics=("parallel", "arbitrary"),
            vmem_limit_bytes=vmem_limit,
        ),
        cost_estimate=stats_cost,
    )(x2)

    # ---------------- O(N*C) scale/bias math in plain JAX (tiny) ----------------
    inv_hw = 1.0 / float(HW)
    mu = x_sum[..., 0] * inv_hw                                   # (N, C)
    var = jnp.maximum(x_ssq[..., 0] * inv_hw - mu * mu, 0.0)      # biased spatial var
    rstd = jax.lax.rsqrt(var + 1e-5)                              # (N, C)

    # Cross-channel normalization of the per-channel means (unbiased var, like torch).
    m = jnp.mean(mu, axis=-1, keepdims=True)                      # (N, 1)
    v = jnp.var(mu, axis=-1, keepdims=True, ddof=1)               # (N, 1); NaN if C==1 (matches torch)
    means_n = (mu - m) / jnp.sqrt(v + 1e-5)                       # (N, C)

    e = jnp.take(embed_weight, y, axis=0).astype(jnp.float32)     # (N, 3C) or (N, 2C)
    if bias:
        gamma, alpha, beta = e[:, :C], e[:, C:2 * C], e[:, 2 * C:]
        s = gamma * rstd
        b = gamma * (means_n * alpha - mu * rstd) + beta
    else:
        gamma, alpha = e[:, :C], e[:, C:]
        s = gamma * rstd
        b = gamma * (means_n * alpha - mu * rstd)

    s = s.reshape(N, C, 1)
    b = b.reshape(N, C, 1)

    # ---------------- Pass 2: streaming out = x * s + b ----------------
    apply_cost = pl.CostEstimate(
        flops=2 * N * C * HW,
        transcendentals=0,
        bytes_accessed=2 * N * C * HW * itemsize + 2 * N * C * 4,
    )
    out = pl.pallas_call(
        _apply_kernel,
        out_shape=jax.ShapeDtypeStruct((N, C, HW), x2.dtype),
        grid_spec=pltpu.PrefetchScalarGridSpec(
            num_scalar_prefetch=0,
            grid=(N, n_hw),
            in_specs=[
                pl.BlockSpec((1, C, T), lambda n, h: (n, 0, h)),
                pl.BlockSpec((1, C, 1), lambda n, h: (n, 0, 0)),
                pl.BlockSpec((1, C, 1), lambda n, h: (n, 0, 0)),
            ],
            out_specs=pl.BlockSpec((1, C, T), lambda n, h: (n, 0, h)),
        ),
        compiler_params=pltpu.CompilerParams(
            dimension_semantics=("parallel", "parallel"),
            vmem_limit_bytes=vmem_limit,
        ),
        cost_estimate=apply_cost,
    )(x2, s, b)

    return out.reshape(N, C, H, W)


# ---------------------------------------------------------------------------
# Pure-JAX reference mirroring the PyTorch forward, for validation.
# ---------------------------------------------------------------------------
def _reference(x, y, embed_weight, num_features, bias=True):
    C = num_features
    means = jnp.mean(x, axis=(2, 3))                              # (N, C)
    m = jnp.mean(means, axis=-1, keepdims=True)
    v = jnp.var(means, axis=-1, keepdims=True, ddof=1)
    means = (means - m) / jnp.sqrt(v + 1e-5)
    mu = jnp.mean(x, axis=(2, 3), keepdims=True)
    var = jnp.var(x, axis=(2, 3), keepdims=True)                  # biased
    h = (x - mu) / jnp.sqrt(var + 1e-5)
    e = jnp.take(embed_weight, y, axis=0)
    if bias:
        gamma, alpha, beta = e[:, :C], e[:, C:2 * C], e[:, 2 * C:]
        h = h + means[..., None, None] * alpha[..., None, None]
        return gamma[..., None, None] * h + beta[..., None, None]
    else:
        gamma, alpha = e[:, :C], e[:, C:]
        h = h + means[..., None, None] * alpha[..., None, None]
        return gamma[..., None, None] * h


if __name__ == "__main__":
    num_features = 4
    num_classes = 10
    N, H, W = 2, 16, 16

    key = jax.random.PRNGKey(0)
    kx, ke, ky = jax.random.split(key, 3)

    x = jax.random.normal(kx, (N, num_features, H, W), dtype=jnp.float32)
    y = jax.random.randint(ky, (N,), 0, num_classes, dtype=jnp.int32)

    # Deterministic embedding init matching the module's __init__:
    # first 2*C columns ~ N(1, 0.02), last C columns zero.
    embed_weight = jnp.concatenate(
        [
            1.0 + 0.02 * jax.random.normal(ke, (num_classes, 2 * num_features), jnp.float32),
            jnp.zeros((num_classes, num_features), jnp.float32),
        ],
        axis=-1,
    )

    out = conditional_instance_norm_2d_plus(x, y, embed_weight, num_features, bias=True)
    out = jax.block_until_ready(out)

    ref = _reference(x, y, embed_weight, num_features, bias=True)
    assert out.shape == (N, num_features, H, W)
    assert jnp.max(jnp.abs(out - ref)) < 1e-4

    # Also exercise the bias=False path.
    out_nb = conditional_instance_norm_2d_plus(
        x, y, embed_weight[:, : 2 * num_features], num_features, bias=False
    )
    out_nb = jax.block_until_ready(out_nb)
    ref_nb = _reference(x, y, embed_weight[:, : 2 * num_features], num_features, bias=False)
    assert jnp.max(jnp.abs(out_nb - ref_nb)) < 1e-4

    print("KERNEL_OK")
</pallas_src>

<mosaic_0001>
module attributes {stable_mosaic.version = 11 : i64} {
  func.func @_stats_kernel(%arg0: i32, %arg1: i32, %arg2: memref<1x4x256xf32, #tpu.memory_space<vmem>>, %arg3: memref<1x4x1xf32, #tpu.memory_space<vmem>>, %arg4: memref<1x4x1xf32, #tpu.memory_space<vmem>>) attributes {dimension_semantics = [#tpu.dimension_semantics<parallel>, #tpu.dimension_semantics<arbitrary>], iteration_bounds = array<i64: 2, 1>, scalar_prefetch = 0 : i64, scratch_operands = 0 : i64, tpu.core_type = #tpu.core_type<tc>, window_params = [{transform_indices = @transform_0, window_bounds = array<i64: 1, 4, 256>}, {transform_indices = @transform_1, window_bounds = array<i64: 1, 4, 1>}, {transform_indices = @transform_2, window_bounds = array<i64: 1, 4, 1>}]} {
    %c0_i32 = arith.constant 0 : i32
    %0 = arith.cmpi eq, %arg1, %c0_i32 : i32
    %1 = arith.extui %0 : i1 to i32
    %c0_i32_0 = arith.constant 0 : i32
    %2 = arith.cmpi ne, %1, %c0_i32_0 : i32
    scf.if %2 {
      %cst_16 = arith.constant 0.000000e+00 : f32
      %15 = vector.broadcast %cst_16 : f32 to vector<1x4x1xf32>
      %c0_17 = arith.constant 0 : index
      %c0_18 = arith.constant 0 : index
      %c0_19 = arith.constant 0 : index
      %16 = vector.load %arg3[%c0_17, %c0_18, %c0_19] : memref<1x4x1xf32, #tpu.memory_space<vmem>>, vector<1x4x1xf32>
      tpu.vector_store %arg3[%c0_17, %c0_18, %c0_19], %15 {strides = array<i32>} : memref<1x4x1xf32, #tpu.memory_space<vmem>>, vector<1x4x1xf32>,
      %cst_20 = arith.constant 0.000000e+00 : f32
      %17 = vector.broadcast %cst_20 : f32 to vector<1x4x1xf32>
      %c0_21 = arith.constant 0 : index
      %c0_22 = arith.constant 0 : index
      %c0_23 = arith.constant 0 : index
      %18 = vector.load %arg4[%c0_21, %c0_22, %c0_23] : memref<1x4x1xf32, #tpu.memory_space<vmem>>, vector<1x4x1xf32>
      tpu.vector_store %arg4[%c0_21, %c0_22, %c0_23], %17 {strides = array<i32>} : memref<1x4x1xf32, #tpu.memory_space<vmem>>, vector<1x4x1xf32>,
    } else {
    }
    %c0 = arith.constant 0 : index
    %c0_1 = arith.constant 0 : index
    %c0_2 = arith.constant 0 : index
    %3 = vector.load %arg2[%c0, %c0_1, %c0_2] : memref<1x4x256xf32, #tpu.memory_space<vmem>>, vector<1x4x256xf32>
    %c0_3 = arith.constant 0 : index
    %c0_4 = arith.constant 0 : index
    %c0_5 = arith.constant 0 : index
    %4 = vector.load %arg3[%c0_3, %c0_4, %c0_5] : memref<1x4x1xf32, #tpu.memory_space<vmem>>, vector<1x4x1xf32>
    %cst = arith.constant dense<0.000000e+00> : vector<1x4xf32>
    %5 = vector.multi_reduction <add>, %3, %cst [2] : vector<1x4x256xf32> to vector<1x4xf32>
    %6 = vector.shape_cast %5 : vector<1x4xf32> to vector<1x4x1xf32>
    %7 = arith.addf %4, %6 : vector<1x4x1xf32>
    %c0_6 = arith.constant 0 : index
    %c0_7 = arith.constant 0 : index
    %c0_8 = arith.constant 0 : index
    %8 = vector.load %arg3[%c0_6, %c0_7, %c0_8] : memref<1x4x1xf32, #tpu.memory_space<vmem>>, vector<1x4x1xf32>
    tpu.vector_store %arg3[%c0_6, %c0_7, %c0_8], %7 {strides = array<i32>} : memref<1x4x1xf32, #tpu.memory_space<vmem>>, vector<1x4x1xf32>,
    %c0_9 = arith.constant 0 : index
    %c0_10 = arith.constant 0 : index
    %c0_11 = arith.constant 0 : index
    %9 = vector.load %arg4[%c0_9, %c0_10, %c0_11] : memref<1x4x1xf32, #tpu.memory_space<vmem>>, vector<1x4x1xf32>
    %10 = arith.mulf %3, %3 : vector<1x4x256xf32>
    %cst_12 = arith.constant dense<0.000000e+00> : vector<1x4xf32>
    %11 = vector.multi_reduction <add>, %10, %cst_12 [2] : vector<1x4x256xf32> to vector<1x4xf32>
    %12 = vector.shape_cast %11 : vector<1x4xf32> to vector<1x4x1xf32>
    %13 = arith.addf %9, %12 : vector<1x4x1xf32>
    %c0_13 = arith.constant 0 : index
    %c0_14 = arith.constant 0 : index
    %c0_15 = arith.constant 0 : index
    %14 = vector.load %arg4[%c0_13, %c0_14, %c0_15] : memref<1x4x1xf32, #tpu.memory_space<vmem>>, vector<1x4x1xf32>
    tpu.vector_store %arg4[%c0_13, %c0_14, %c0_15], %13 {strides = array<i32>} : memref<1x4x1xf32, #tpu.memory_space<vmem>>, vector<1x4x1xf32>,
    return
  }
  func.func @transform_0(%arg0: i32, %arg1: i32) -> (i32, i32, i32) {
    %c0_i32 = arith.constant 0 : i32
    %c0_i32_0 = arith.constant 0 : i32
    return %arg0, %c0_i32, %arg1 : i32, i32, i32
  }
  func.func @transform_1(%arg0: i32, %arg1: i32) -> (i32, i32, i32) {
    %c0_i32 = arith.constant 0 : i32
    %c0_i32_0 = arith.constant 0 : i32
    %c0_i32_1 = arith.constant 0 : i32
    return %arg0, %c0_i32, %c0_i32_0 : i32, i32, i32
  }
  func.func @transform_2(%arg0: i32, %arg1: i32) -> (i32, i32, i32) {
    %c0_i32 = arith.constant 0 : i32
    %c0_i32_0 = arith.constant 0 : i32
    %c0_i32_1 = arith.constant 0 : i32
    return %arg0, %c0_i32, %c0_i32_0 : i32, i32, i32
  }
}

</mosaic_0001>

<bundles_post_ra>
// kernel: tpu_custom_call.1
= control target key start
LH: loop header
LB: loop body
LE: loop exit
PB: predicated region body
PF: predicated region fallthrough
CT: control target
= control target key end

     0   :  { %8 = vsyncpa [#allocation3], 0  ;;  %s603_s0 = inlined_call_operand.hbm [shape: f32[2,4,256], index: 0, kind: input, shape index: {}]   ;;  %s604_s1 = inlined_call_operand.vmem [shape: f32[2,4,1], index: 1, kind: output, shape index: {0}]   ;;  %s605_s2 = inlined_call_operand.vmem [shape: f32[2,4,1], index: 2, kind: output, shape index: {1}]  }
   0x1   :  { %10 = vsyncpa [#allocation3 + $0x1], 0  ;;  %s496_s9 = smov 0   ;;  %s498_s10 = smov 0  }
   0x2   :  { %s500_s11 = smov 0   ;;  %s502_s12 = smov 0  }
   0x3   :  { %s504_s13 = smov 0   ;;  %s506_s14 = smov 0  }
   0x4 LB: > { %s328_s15 = sadd.s32 4294967295, %s477_s14   ;;  %s28_s16 = sadd.s32 1, %s473_s13  ;;  %s477_s14 = sphi %s506_s14, %s16_s14   ;;  %s473_s13 = sphi %s504_s13, %s613_s13   ;;  %s469_s12 = sphi %s502_s12, %s612_s12   ;;  %s465_s11 = sphi %s500_s11, %s611_s11   ;;  %s461_s10 = sphi %s498_s10, %s610_s10   ;;  %s457_s9 = sphi %s496_s9, %s609_s9  }
   0x5   : > { %p30_p0 = scmp.ge.s32.totalorder %s28_s16, 2  ;;  %s37_s17 = sadd.s32 1, %s465_s11 }
   0x6   : > { %p44_p1 = scmp.ne.s32.totalorder %s465_s11, %s461_s10  ;;  %p45_p2 = scmp.eq.s32.totalorder %s477_s14, 0 }
   0x7   : > { %s615_s16 = smov (%p30_p0, %s28_s16), 0  ;;  %p50_p4 = scmp.ne.s32.totalorder %s461_s10, %s457_s9 }
   0x8   : > { %p532_p3 = por %p45_p2, %p44_p1  ;;  %s32_s19 = ssub.s32 %s473_s13, %s615_s16 }
   0x9   : > { %p51_p5 = scmp.eq.s32.totalorder %s328_s15, 0  ;;  %p35_p6 = scmp.eq.s32.totalorder %s32_s19, 0 }
   0xa   : > { %p348_p8 = scmp.lt.s32.totalorder %s477_s14, 2  ;;  %s126_s22 = sand.u32 1, %s465_s11  }
   0xb   : > { %p539_p7 = por %p51_p5, %p50_p4  ;;  %s341_s23 = sshll.u32 %s473_s13, 7 }
   0xc   : > { %s545_s21 = scalar_select %p35_p6, %s465_s11, %s37_s17  }
   0xd   : > { %s332_s24 = sshll.u32 %s126_s22, 3  ;;  %s138_s27 = scalar_lea.hbm %s603_s0, %s341_s23 }
   0xe   : > { %s130_s28 = scalar_lea.vmem [#allocation2], %s332_s24  ;;  %p554_p9 = pnand %p348_p8, %p532_p3 }
   0xf   : > { %s140_s29 = sshll.u32 %s130_s28, 4  ;;  %p335_p10 = scmp.ge.s32.totalorder %s477_s14, 1  ;;  %s141_s29 = int_to_ptr.vmem [resolvable:$true] %s140_s29 }
  0x10   : > { %p145_p11 = scmp.lt.s32.totalorder %s477_s14, 3  ;;  %s127_s3 = scalar_lea.sflag [#allocation3], %s126_s22 }
  0x11   : > { %p401_p12 = pneg %p554_p9  ;;  %s412_s4 = scalar_lea.vmem %s141_s29, 128 }
  0x12   : > { %p413_p13 = scmp.ne.s32.totalorder %s141_s29, %s412_s4  ;;  %s479_s5 = smov [#allocation2]  }
  0x13   : > { %s417_s6 = sshll.u32 %s479_s5, 4  ;;  %s418_s6 = int_to_ptr.vmem [resolvable:$false] %s417_s6 }
  0x14   : > { %p415_p0 = pnand %p413_p13, %p401_p12  ;;  %s419_s7 = scalar_lea.vmem %s418_s6, 256 }
  0x15   : > { %p420_p2 = scmp.lt.s32.totalorder %s141_s29, %s418_s6  ;;  %p421_p3 = scmp.lt.s32.totalorder %s419_s7, %s412_s4 }
  0x16   : > { %p416_p1 = pneg %p415_p0 }
  0x17   : > { %p422_p4 = por %p421_p3, %p420_p2 }
  0x19   : > { %p423_p5 = pnand %p422_p4, %p416_p1 }
  0x1b   : > { %426 = shalt.err (!%p423_p5)
}
  0x1c   : > { %347 = dma.hbm_to_vmem [thread:$0]  (!%p554_p9), %s138_s27, 128, %s141_s29, %s127_s3  }
  0x1d   : > { %p146_p6 = pnand %p335_p10, %p145_p11 }
  0x1e   : > { %s151_s8 = sand.u32 (!%p146_p6), 1, %s461_s10  }
  0x1f   : > { %149 = sbr.rel (%p146_p6) target bundleno = 188 (0xbc), region = 24  ;;  %s336_s9 = sshll.u32 (!%p146_p6), %s151_s8, 3 }
  0x20   : > { %s152_s15 = scalar_lea.sflag (!%p146_p6), [#allocation3], %s151_s8  ;;  %s155_s17 = scalar_lea.vmem (!%p146_p6), [#allocation2], %s336_s9 }
  0x24   : > { %452 = dma.done.wait (%p539_p7), %s152_s15, 128  }
  0x25   : > { %454 = vsyncadd (%p539_p7), %s152_s15, 4294967168  ;;  %p180_p8 = scmp.lt.s32.totalorder %s469_s12, 1  ;;  %vm192_vm0 = vcmask 3072   ;;  %vm200_vm1 = vcmask 1043456   ;;  %v480_v0 = vmov 0.0   ;;  %v195_v1 = vld [vmem:[%s155_s17] sm:$0xff] }
  0x26   : > { %v198_v2 = vcombine.high %v195_v1, %v195_v1  ;;  %v201_v3 = vsel %vm200_vm1, %v195_v1, 0.0  ;;  %v210_v4 = vmul.f32 %v195_v1, %v195_v1 }
  0x27   : > { %s617_s12 = smov (!%p180_p8, %s469_s12), 1 }
  0x28   : > { %s337_s18 = sshll.u32 %s617_s12, 2  ;;  %v202_v5 = vsel %vm200_vm1, %v198_v2, 0.0  ;;  %v212_v6 = vcombine.high %v210_v4, %v210_v4  ;;  %v214_v7 = vsel %vm200_vm1, %v210_v4, 0.0 }
  0x29   : > { %s183_s23 = scalar_lea.vmem %s604_s1, %s337_s18  ;;  %v203_v8 = vadd.f32 %v202_v5, %v201_v3  ;;  %s187_s24 = scalar_lea.vmem %s605_s2, %s337_s18 }
  0x2a   : > { %193 = vst.msk [vmem:[%s183_s23] sm:$0xf] %vm192_vm0, %v480_v0  ;;  %v215_v9 = vsel %vm200_vm1, %v212_v6, 0.0  ;;  %194 = vst.msk [vmem:[%s187_s24] sm:$0xf] %vm192_vm0, %v480_v0 }
  0x2b   : > { %204 = vadd.xlane.f32.xlu0 %v203_v8  ;;  %v216_v10 = vadd.f32 %v215_v9, %v214_v7 }
  0x2f   : > { %217 = vadd.xlane.f32.xlu0 %v216_v10 }
  0x31   : > { %v196_v11 = vld [vmem:[%s183_s23] sm:$0xf] }
  0x32   : > { %v209_v14 = vld [vmem:[%s187_s24] sm:$0xf] }
  0xb4   : > { %v205_v12 = vpop.xlane.xlu0 %204 }
  0xb5   : > { %v206_v13 = vadd.f32 %v205_v12, %v196_v11 }
  0xb7   : > { %208 = vst.msk [vmem:[%s183_s23] sm:$0xf] %vm192_vm0, %v206_v13 }
  0xb8   : > { %v218_v15 = vpop.xlane.xlu0 %217 }
  0xb9   : > { %v219_v16 = vadd.f32 %v218_v15, %v209_v14 }
  0xbb   : > { %220 = vst.msk [vmem:[%s187_s24] sm:$0xf] %vm192_vm0, %v219_v16 }
  0xbc PF: > { %s16_s14 = sadd.s32 1, %s477_s14   ;;  %s609_s9 = smov %s461_s10 }
  0xbd   : > { %p13_p7 = scmp.ge.s32.totalorder %s16_s14, 4   ;;  %s610_s10 = smov %s465_s11 }
  0xbe   : > { %s611_s11 = smov %s545_s21  ;;  %s612_s12 = smov %s473_s13 }
  0xbf   : > { %s613_s13 = smov %s615_s16  ;;  %15 = sbr.rel (!%p13_p7) target bundleno = 4 (0x4), region = 80 }
  0xc4   :  { %254 = vsyncpa [#allocation3], 1 }
  0xc5   :  { %256 = vsyncpa [#allocation3 + $0x1], 1 }

</bundles_post_ra>
